<compile_context>
chip_gen: v6e
topology: v6e:2x2x1
jax: 0.10.0
libtpu: 0.0.40
codegen_flags: <defaults>
</compile_context>

<pallas_src>
from functools import partial

import jax
import jax.numpy as jnp
from jax.experimental import pallas as pl
from jax.experimental.pallas import tpu as pltpu

_EPS = 1e-5
_VMEM_LIMIT = 32 * 1024 * 1024     # scoped-VMEM budget (safe on v5e/v6e/v7x)
_MAX_TILE_M = 32768                # lane-tile upper bound


def _choose_tile_m(M, cols_f32):
    """Pick the lane tile along M from the VMEM budget (double-buffered)."""
    budget = _VMEM_LIMIT // 2
    bytes_per_col = cols_f32 * 4 * 2          # x2: double-buffered pipelining
    max_tile = (budget // (bytes_per_col * 128)) * 128
    max_tile = int(min(max(max_tile, 128), _MAX_TILE_M))
    if M <= max_tile:
        return M, 1, False                    # single tile == full dim, no pad
    n_t = int(pl.cdiv(M, max_tile))
    tile_m = 128 * int(pl.cdiv(int(pl.cdiv(M, n_t)), 128))
    n_t = int(pl.cdiv(M, tile_m))
    return int(tile_m), n_t, bool(n_t * tile_m != M)


# ---------------------------------------------------------------------------
# Kernel 1: BatchNorm statistics (2-phase reduction over batch x M tiles)
#   phase 0: accumulate sum / sumsq of h1 = W1r@fr + W1i@fi
#   phase 1: with finalized BN1 affine, accumulate sum / sumsq of
#            h2 = W2 @ relu(BN1(h1)); emit BN1/BN2 affine coefficients once.
# ---------------------------------------------------------------------------
def _stats_kernel(fr_ref, fi_ref, w1r_ref, w1i_ref, g1_ref, be1_ref,
                  w2_ref, g2_ref, be2_ref,
                  a1_ref, c1_ref, a2_ref, c2_ref,
                  s1_ref, q1_ref, s2_ref, q2_ref,
                  *, count, m_true, tile_m, n_t, has_pad):
    phase = pl.program_id(0)
    b = pl.program_id(1)
    m_idx = pl.program_id(2)
    n_b = pl.num_programs(1)
    inv_n = 1.0 / count

    @pl.when((phase == 0) & (b == 0) & (m_idx == 0))
    def _init():
        s1_ref[...] = jnp.zeros_like(s1_ref)
        q1_ref[...] = jnp.zeros_like(q1_ref)
        s2_ref[...] = jnp.zeros_like(s2_ref)
        q2_ref[...] = jnp.zeros_like(q2_ref)

    # conv1 pre-activation; conv bias dropped (no-op before BatchNorm)
    h1 = (jnp.dot(w1r_ref[...], fr_ref[...], preferred_element_type=jnp.float32)
          + jnp.dot(w1i_ref[...], fi_ref[...], preferred_element_type=jnp.float32))

    @pl.when(phase == 0)
    def _pass0():
        # zero-padded tail columns of fr/fi are exactly zero -> no mask needed
        s1_ref[...] += jnp.sum(h1, axis=1, keepdims=True)
        q1_ref[...] += jnp.sum(h1 * h1, axis=1, keepdims=True)

    @pl.when(phase == 1)
    def _pass1():
        mean1 = s1_ref[...] * inv_n
        var1 = jnp.maximum(q1_ref[...] * inv_n - mean1 * mean1, 0.0)
        a1 = g1_ref[...] * jax.lax.rsqrt(var1 + _EPS)
        c1 = be1_ref[...] - mean1 * a1
        y1 = jnp.maximum(h1 * a1 + c1, 0.0)
        h2 = jnp.dot(w2_ref[...], y1, preferred_element_type=jnp.float32)
        if has_pad:
            # padded tail columns are NOT zero after BN1 + ReLU -> mask them
            col = m_idx * tile_m + jax.lax.broadcasted_iota(jnp.int32, h2.shape, 1)
            h2 = jnp.where(col < m_true, h2, 0.0)
        s2_ref[...] += jnp.sum(h2, axis=1, keepdims=True)
        q2_ref[...] += jnp.sum(h2 * h2, axis=1, keepdims=True)

    # finalize + write fused BN affine coefficients once, at the last grid step
    @pl.when((phase == 1) & (b == n_b - 1) & (m_idx == n_t - 1))
    def _finalize():
        # NOTE: E[x^2]-E[x]^2 in f32; fine at these sizes, consider a shifted /
        # two-level scheme for very large batch*spatial extents.
        mean1 = s1_ref[...] * inv_n
        var1 = jnp.maximum(q1_ref[...] * inv_n - mean1 * mean1, 0.0)
        a1 = g1_ref[...] * jax.lax.rsqrt(var1 + _EPS)
        a1_ref[...] = a1
        c1_ref[...] = be1_ref[...] - mean1 * a1
        mean2 = s2_ref[...] * inv_n
        var2 = jnp.maximum(q2_ref[...] * inv_n - mean2 * mean2, 0.0)
        a2 = g2_ref[...] * jax.lax.rsqrt(var2 + _EPS)
        a2_ref[...] = a2
        c2_ref[...] = be2_ref[...] - mean2 * a2


# ---------------------------------------------------------------------------
# Kernel 2: apply the whole frequency-domain path per (batch, M) tile.
# w3/b3 already include the folded output_conv weight (blockdiag(W_out,W_out)).
# ---------------------------------------------------------------------------
def _apply_kernel(fr_ref, fi_ref, w1r_ref, w1i_ref, w2_ref, w3_ref, b3_ref,
                  a1_ref, c1_ref, a2_ref, c2_ref, o_ref):
    h1 = (jnp.dot(w1r_ref[...], fr_ref[...], preferred_element_type=jnp.float32)
          + jnp.dot(w1i_ref[...], fi_ref[...], preferred_element_type=jnp.float32))
    y1 = jnp.maximum(h1 * a1_ref[...] + c1_ref[...], 0.0)
    h2 = jnp.dot(w2_ref[...], y1, preferred_element_type=jnp.float32)
    y2 = jnp.maximum(h2 * a2_ref[...] + c2_ref[...], 0.0)
    o_ref[...] = (jnp.dot(w3_ref[...], y2, preferred_element_type=jnp.float32)
                  + b3_ref[...])


# ---------------------------------------------------------------------------
# Wrapper for the frequency path
# ---------------------------------------------------------------------------
def freq_path(fr, fi, w1, g1, be1, w2, g2, be2, w3f, b3f):
    """fr, fi: (B, Cin, M) f32. Returns (B, 2*Cout, M) f32."""
    B, ci, M = fr.shape
    co2 = w1.shape[0]
    w1r = w1[:, :ci]
    w1i = w1[:, ci:]

    tile_m, n_t, has_pad = _choose_tile_m(M, 2 * ci + co2)
    Mp = n_t * tile_m
    if has_pad:
        fr = jnp.pad(fr, ((0, 0), (0, 0), (0, Mp - M)))
        fi = jnp.pad(fi, ((0, 0), (0, 0), (0, Mp - M)))

    # ---- stats pass (serial reduction over batch and M tiles) ----
    act_spec3 = pl.BlockSpec((pl.Squeezed(), ci, tile_m), lambda p, b, m: (b, 0, m))
    const3 = lambda p, b, m: (0, 0)
    vec3 = pl.BlockSpec((co2, 1), const3)

    a1, c1, a2, c2 = pl.pallas_call(
        partial(_stats_kernel, count=float(B * M), m_true=M, tile_m=tile_m,
                n_t=n_t, has_pad=has_pad),
        out_shape=(jax.ShapeDtypeStruct((co2, 1), jnp.float32),) * 4,
        grid=(2, B, n_t),
        in_specs=[act_spec3, act_spec3,
                  pl.BlockSpec((co2, ci), const3),
                  pl.BlockSpec((co2, ci), const3),
                  vec3, vec3,
                  pl.BlockSpec((co2, co2), const3),
                  vec3, vec3],
        out_specs=[pl.BlockSpec((co2, 1), const3)] * 4,
        scratch_shapes=[pltpu.VMEM((co2, 1), jnp.float32)] * 4,
        compiler_params=pltpu.CompilerParams(
            dimension_semantics=("arbitrary", "arbitrary", "arbitrary"),
            vmem_limit_bytes=_VMEM_LIMIT),
    )(fr, fi, w1r, w1i, g1, be1, w2, g2, be2)

    # ---- apply pass (fully parallel over batch and M tiles) ----
    act_spec2 = pl.BlockSpec((pl.Squeezed(), ci, tile_m), lambda b, m: (b, 0, m))
    const2 = lambda b, m: (0, 0)
    vec2 = pl.BlockSpec((co2, 1), const2)

    out = pl.pallas_call(
        _apply_kernel,
        out_shape=jax.ShapeDtypeStruct((B, co2, Mp), jnp.float32),
        grid=(B, n_t),
        in_specs=[act_spec2, act_spec2,
                  pl.BlockSpec((co2, ci), const2),
                  pl.BlockSpec((co2, ci), const2),
                  pl.BlockSpec((co2, co2), const2),
                  pl.BlockSpec((co2, co2), const2),
                  vec2, vec2, vec2, vec2, vec2],
        out_specs=pl.BlockSpec((pl.Squeezed(), co2, tile_m), lambda b, m: (b, 0, m)),
        compiler_params=pltpu.CompilerParams(
            dimension_semantics=("parallel", "parallel"),
            vmem_limit_bytes=_VMEM_LIMIT),
    )(fr, fi, w1r, w1i, w2, w3f, b3f, a1, c1, a2, c2)

    if has_pad:
        out = out[:, :, :M]
    return out


# ---------------------------------------------------------------------------
# Full forward pass (FFT / iFFT in plain JAX, no transposes, no spatial conv)
# ---------------------------------------------------------------------------
def spectral_transform_forward(x, params):
    B, C, H, W = x.shape
    Wf = W // 2 + 1
    co2 = params["w3"].shape[0]
    co = co2 // 2

    # TODO(synk): no Pallas FFT primitive; rfft2/irfft2 stay in jnp.fft.
    fc = jnp.fft.rfft2(x, norm="ortho")                  # (B, C, H, Wf) complex64
    fr = jnp.real(fc).reshape(B, C, H * Wf)              # natural layout, free reshape
    fi = jnp.imag(fc).reshape(B, C, H * Wf)

    # Fold output_conv into the frequency path (trace-time, tiny matmuls):
    # W_out @ irfft2(z) == irfft2(blockdiag(W_out, W_out) @ z)
    w_out = params["w_out"]
    w3, b3 = params["w3"], params["b3"]
    w3f = jnp.concatenate([w_out @ w3[:co], w_out @ w3[co:]], axis=0)
    b3f = jnp.concatenate([w_out @ b3[:co], w_out @ b3[co:]], axis=0)

    outT = freq_path(fr, fi,
                     params["w1"], params["g1"], params["be1"],
                     params["w2"], params["g2"], params["be2"],
                     w3f, b3f)                           # (B, 2*Cout, H*Wf)

    out = outT.reshape(B, co2, H, Wf)
    out_c = out[:, :co] + 1j * out[:, co:]
    out_sp = jnp.fft.irfft2(out_c, s=(H, W), norm="ortho")   # (B, Cout, H, W)
    # remaining piece of output_conv: its bias, a plain per-channel broadcast add
    return out_sp + params["b_out"].reshape(1, co, 1, 1)


# ---------------------------------------------------------------------------
# Pure-JAX reference (faithful to the PyTorch module, training-mode BN)
# ---------------------------------------------------------------------------
def _reference(x, p):
    B, C, H, W = x.shape
    Wf = W // 2 + 1
    fc = jnp.fft.rfft2(x, norm="ortho")
    feat = jnp.concatenate([fc.real, fc.imag], axis=1)
    xm = feat.transpose(0, 2, 3, 1).reshape(-1, 2 * C)

    def bn_relu(y, g, be):
        m = jnp.mean(y, axis=0, keepdims=True)
        v = jnp.mean((y - m) ** 2, axis=0, keepdims=True)
        return jnp.maximum((y - m) / jnp.sqrt(v + _EPS) * g + be, 0.0)

    y = bn_relu(xm @ p["w1"].T + p["b1"].T, p["g1"].T, p["be1"].T)
    y = bn_relu(y @ p["w2"].T + p["b2"].T, p["g2"].T, p["be2"].T)
    y = y @ p["w3"].T + p["b3"].T
    co2 = y.shape[1]
    co = co2 // 2
    y = y.reshape(B, H, Wf, co2).transpose(0, 3, 1, 2)
    yc = y[:, :co] + 1j * y[:, co:]
    ys = jnp.fft.irfft2(yc, s=(H, W), norm="ortho")
    ym = ys.transpose(0, 2, 3, 1).reshape(-1, co)
    z = ym @ p["w_out"].T + p["b_out"].T
    return z.reshape(B, H, W, co).transpose(0, 3, 1, 2)


def make_params(key, in_channels, out_channels):
    ci2, co2, co = 2 * in_channels, 2 * out_channels, out_channels
    ks = jax.random.split(key, 8)
    f32 = jnp.float32
    return {
        # conv weights stored as (C_out, C_in) matrices (== PyTorch weight[:, :, 0, 0])
        "w1": 0.1 * jax.random.normal(ks[0], (co2, ci2), f32),
        "b1": 0.1 * jax.random.normal(ks[1], (co2, 1), f32),   # no-op before BN; ref only
        "g1": jnp.ones((co2, 1), f32),
        "be1": jnp.zeros((co2, 1), f32),
        "w2": 0.1 * jax.random.normal(ks[2], (co2, co2), f32),
        "b2": 0.1 * jax.random.normal(ks[3], (co2, 1), f32),   # no-op before BN; ref only
        "g2": jnp.ones((co2, 1), f32),
        "be2": jnp.zeros((co2, 1), f32),
        "w3": 0.1 * jax.random.normal(ks[4], (co2, co2), f32),
        "b3": 0.1 * jax.random.normal(ks[5], (co2, 1), f32),
        "w_out": 0.1 * jax.random.normal(ks[6], (co, co), f32),
        "b_out": 0.1 * jax.random.normal(ks[7], (co, 1), f32),
    }


if __name__ == "__main__":
    key = jax.random.PRNGKey(0)
    k_x, k_p = jax.random.split(key)

    B, C_IN, C_OUT, H, W = 2, 4, 4, 16, 16
    x = jax.random.normal(k_x, (B, C_IN, H, W), jnp.float32)
    params = make_params(k_p, C_IN, C_OUT)

    out = jax.block_until_ready(spectral_transform_forward(x, params))
    ref = _reference(x, params)

    assert out.shape == (B, C_OUT, H, W), out.shape
    max_err = float(jnp.max(jnp.abs(out - ref)))
    assert jnp.allclose(out, ref, atol=5e-4, rtol=5e-4), f"mismatch vs reference: {max_err}"

    print("KERNEL_OK")
</pallas_src>

<mosaic_0001>
module attributes {stable_mosaic.version = 11 : i64} {
  func.func @_stats_kernel(%arg0: i32, %arg1: i32, %arg2: i32, %arg3: memref<1x4x144xf32, #tpu.memory_space<vmem>>, %arg4: memref<1x4x144xf32, #tpu.memory_space<vmem>>, %arg5: memref<8x4xf32, #tpu.memory_space<vmem>>, %arg6: memref<8x4xf32, #tpu.memory_space<vmem>>, %arg7: memref<8x1xf32, #tpu.memory_space<vmem>>, %arg8: memref<8x1xf32, #tpu.memory_space<vmem>>, %arg9: memref<8x8xf32, #tpu.memory_space<vmem>>, %arg10: memref<8x1xf32, #tpu.memory_space<vmem>>, %arg11: memref<8x1xf32, #tpu.memory_space<vmem>>, %arg12: memref<8x1xf32, #tpu.memory_space<vmem>>, %arg13: memref<8x1xf32, #tpu.memory_space<vmem>>, %arg14: memref<8x1xf32, #tpu.memory_space<vmem>>, %arg15: memref<8x1xf32, #tpu.memory_space<vmem>>, %arg16: memref<8x1xf32, #tpu.memory_space<vmem>>, %arg17: memref<8x1xf32, #tpu.memory_space<vmem>>, %arg18: memref<8x1xf32, #tpu.memory_space<vmem>>, %arg19: memref<8x1xf32, #tpu.memory_space<vmem>>) attributes {dimension_semantics = [#tpu.dimension_semantics<arbitrary>, #tpu.dimension_semantics<arbitrary>, #tpu.dimension_semantics<arbitrary>], iteration_bounds = array<i64: 2, 2, 1>, scalar_prefetch = 0 : i64, scratch_operands = 4 : i64, tpu.core_type = #tpu.core_type<tc>, window_params = [{transform_indices = @transform_0, window_bounds = array<i64: 1, 4, 144>}, {transform_indices = @transform_1, window_bounds = array<i64: 1, 4, 144>}, {pipeline_mode = #tpu.pipeline_mode<synchronous>, transform_indices = @transform_2, window_bounds = array<i64: 8, 4>}, {pipeline_mode = #tpu.pipeline_mode<synchronous>, transform_indices = @transform_3, window_bounds = array<i64: 8, 4>}, {pipeline_mode = #tpu.pipeline_mode<synchronous>, transform_indices = @transform_4, window_bounds = array<i64: 8, 1>}, {pipeline_mode = #tpu.pipeline_mode<synchronous>, transform_indices = @transform_5, window_bounds = array<i64: 8, 1>}, {pipeline_mode = #tpu.pipeline_mode<synchronous>, transform_indices = @transform_6, window_bounds = array<i64: 8, 8>}, {pipeline_mode = #tpu.pipeline_mode<synchronous>, transform_indices = @transform_7, window_bounds = array<i64: 8, 1>}, {pipeline_mode = #tpu.pipeline_mode<synchronous>, transform_indices = @transform_8, window_bounds = array<i64: 8, 1>}, {pipeline_mode = #tpu.pipeline_mode<synchronous>, transform_indices = @transform_9, window_bounds = array<i64: 8, 1>}, {pipeline_mode = #tpu.pipeline_mode<synchronous>, transform_indices = @transform_10, window_bounds = array<i64: 8, 1>}, {pipeline_mode = #tpu.pipeline_mode<synchronous>, transform_indices = @transform_11, window_bounds = array<i64: 8, 1>}, {pipeline_mode = #tpu.pipeline_mode<synchronous>, transform_indices = @transform_12, window_bounds = array<i64: 8, 1>}]} {
    %c0_i32 = arith.constant 0 : i32
    %0 = arith.cmpi eq, %arg0, %c0_i32 : i32
    %c0_i32_0 = arith.constant 0 : i32
    %1 = arith.cmpi eq, %arg1, %c0_i32_0 : i32
    %2 = arith.andi %0, %1 : i1
    %c0_i32_1 = arith.constant 0 : i32
    %3 = arith.cmpi eq, %arg2, %c0_i32_1 : i32
    %4 = arith.andi %2, %3 : i1
    %5 = arith.extui %4 : i1 to i32
    %c0_i32_2 = arith.constant 0 : i32
    %6 = arith.cmpi ne, %5, %c0_i32_2 : i32
    scf.if %6 {
      %cst_20 = arith.constant 0.000000e+00 : f32
      %29 = vector.broadcast %cst_20 : f32 to vector<8x1xf32>
      %c0_21 = arith.constant 0 : index
      %c0_22 = arith.constant 0 : index
      %30 = vector.load %arg16[%c0_21, %c0_22] : memref<8x1xf32, #tpu.memory_space<vmem>>, vector<8x1xf32>
      tpu.vector_store %arg16[%c0_21, %c0_22], %29 {strides = array<i32>} : memref<8x1xf32, #tpu.memory_space<vmem>>, vector<8x1xf32>,
      %cst_23 = arith.constant 0.000000e+00 : f32
      %31 = vector.broadcast %cst_23 : f32 to vector<8x1xf32>
      %c0_24 = arith.constant 0 : index
      %c0_25 = arith.constant 0 : index
      %32 = vector.load %arg17[%c0_24, %c0_25] : memref<8x1xf32, #tpu.memory_space<vmem>>, vector<8x1xf32>
      tpu.vector_store %arg17[%c0_24, %c0_25], %31 {strides = array<i32>} : memref<8x1xf32, #tpu.memory_space<vmem>>, vector<8x1xf32>,
      %cst_26 = arith.constant 0.000000e+00 : f32
      %33 = vector.broadcast %cst_26 : f32 to vector<8x1xf32>
      %c0_27 = arith.constant 0 : index
      %c0_28 = arith.constant 0 : index
      %34 = vector.load %arg18[%c0_27, %c0_28] : memref<8x1xf32, #tpu.memory_space<vmem>>, vector<8x1xf32>
      tpu.vector_store %arg18[%c0_27, %c0_28], %33 {strides = array<i32>} : memref<8x1xf32, #tpu.memory_space<vmem>>, vector<8x1xf32>,
      %cst_29 = arith.constant 0.000000e+00 : f32
      %35 = vector.broadcast %cst_29 : f32 to vector<8x1xf32>
      %c0_30 = arith.constant 0 : index
      %c0_31 = arith.constant 0 : index
      %36 = vector.load %arg19[%c0_30, %c0_31] : memref<8x1xf32, #tpu.memory_space<vmem>>, vector<8x1xf32>
      tpu.vector_store %arg19[%c0_30, %c0_31], %35 {strides = array<i32>} : memref<8x1xf32, #tpu.memory_space<vmem>>, vector<8x1xf32>,
    } else {
    }
    %c0 = arith.constant 0 : index
    %c0_3 = arith.constant 0 : index
    %7 = vector.load %arg5[%c0, %c0_3] : memref<8x4xf32, #tpu.memory_space<vmem>>, vector<8x4xf32>
    %c0_4 = arith.constant 0 : index
    %c0_5 = arith.constant 0 : index
    %c0_6 = arith.constant 0 : index
    %8 = vector.load %arg3[%c0_4, %c0_5, %c0_6] : memref<1x4x144xf32, #tpu.memory_space<vmem>>, vector<1x4x144xf32>
    %9 = vector.shape_cast %8 : vector<1x4x144xf32> to vector<4x144xf32>
    %cst = arith.constant dense<0.000000e+00> : vector<8x144xf32>
    %10 = tpu.matmul %7, %9, %cst {dimension_numbers = #tpu.dot_dimension_numbers<[1], [0], [0], [1], [0, 0, 1, 1], [], []>} : vector<8x4xf32>, vector<4x144xf32>, vector<8x144xf32> -> vector<8x144xf32>
    %c0_7 = arith.constant 0 : index
    %c0_8 = arith.constant 0 : index
    %11 = vector.load %arg6[%c0_7, %c0_8] : memref<8x4xf32, #tpu.memory_space<vmem>>, vector<8x4xf32>
    %c0_9 = arith.constant 0 : index
    %c0_10 = arith.constant 0 : index
    %c0_11 = arith.constant 0 : index
    %12 = vector.load %arg4[%c0_9, %c0_10, %c0_11] : memref<1x4x144xf32, #tpu.memory_space<vmem>>, vector<1x4x144xf32>
    %13 = vector.shape_cast %12 : vector<1x4x144xf32> to vector<4x144xf32>
    %cst_12 = arith.constant dense<0.000000e+00> : vector<8x144xf32>
    %14 = tpu.matmul %11, %13, %cst_12 {dimension_numbers = #tpu.dot_dimension_numbers<[1], [0], [0], [1], [0, 0, 1, 1], [], []>} : vector<8x4xf32>, vector<4x144xf32>, vector<8x144xf32> -> vector<8x144xf32>
    %15 = arith.addf %10, %14 : vector<8x144xf32>
    %c0_i32_13 = arith.constant 0 : i32
    %16 = arith.cmpi eq, %arg0, %c0_i32_13 : i32
    %17 = arith.extui %16 : i1 to i32
    %c0_i32_14 = arith.constant 0 : i32
    %18 = arith.cmpi ne, %17, %c0_i32_14 : i32
    scf.if %18 {
      %c0_20 = arith.constant 0 : index
      %c0_21 = arith.constant 0 : index
      %29 = vector.load %arg16[%c0_20, %c0_21] : memref<8x1xf32, #tpu.memory_space<vmem>>, vector<8x1xf32>
      %cst_22 = arith.constant dense<0.000000e+00> : vector<8xf32>
      %30 = vector.multi_reduction <add>, %15, %cst_22 [1] : vector<8x144xf32> to vector<8xf32>
      %31 = vector.shape_cast %30 : vector<8xf32> to vector<8x1xf32>
      %32 = arith.addf %29, %31 : vector<8x1xf32>
      %c0_23 = arith.constant 0 : index
      %c0_24 = arith.constant 0 : index
      %33 = vector.load %arg16[%c0_23, %c0_24] : memref<8x1xf32, #tpu.memory_space<vmem>>, vector<8x1xf32>
      tpu.vector_store %arg16[%c0_23, %c0_24], %32 {strides = array<i32>} : memref<8x1xf32, #tpu.memory_space<vmem>>, vector<8x1xf32>,
      %c0_25 = arith.constant 0 : index
      %c0_26 = arith.constant 0 : index
      %34 = vector.load %arg17[%c0_25, %c0_26] : memref<8x1xf32, #tpu.memory_space<vmem>>, vector<8x1xf32>
      %35 = arith.mulf %15, %15 : vector<8x144xf32>
      %cst_27 = arith.constant dense<0.000000e+00> : vector<8xf32>
      %36 = vector.multi_reduction <add>, %35, %cst_27 [1] : vector<8x144xf32> to vector<8xf32>
      %37 = vector.shape_cast %36 : vector<8xf32> to vector<8x1xf32>
      %38 = arith.addf %34, %37 : vector<8x1xf32>
      %c0_28 = arith.constant 0 : index
      %c0_29 = arith.constant 0 : index
      %39 = vector.load %arg17[%c0_28, %c0_29] : memref<8x1xf32, #tpu.memory_space<vmem>>, vector<8x1xf32>
      tpu.vector_store %arg17[%c0_28, %c0_29], %38 {strides = array<i32>} : memref<8x1xf32, #tpu.memory_space<vmem>>, vector<8x1xf32>,
    } else {
    }
    %c1_i32 = arith.constant 1 : i32
    %19 = arith.cmpi eq, %arg0, %c1_i32 : i32
    %20 = arith.extui %19 : i1 to i32
    %c0_i32_15 = arith.constant 0 : i32
    %21 = arith.cmpi ne, %20, %c0_i32_15 : i32
    scf.if %21 {
      %c0_20 = arith.constant 0 : index
      %c0_21 = arith.constant 0 : index
      %29 = vector.load %arg16[%c0_20, %c0_21] : memref<8x1xf32, #tpu.memory_space<vmem>>, vector<8x1xf32>
      %cst_22 = arith.constant 0.00347222225 : f32
      %30 = vector.broadcast %cst_22 : f32 to vector<8x1xf32>
      %31 = arith.mulf %29, %30 : vector<8x1xf32>
      %c0_23 = arith.constant 0 : index
      %c0_24 = arith.constant 0 : index
      %32 = vector.load %arg17[%c0_23, %c0_24] : memref<8x1xf32, #tpu.memory_space<vmem>>, vector<8x1xf32>
      %cst_25 = arith.constant 0.00347222225 : f32
      %33 = vector.broadcast %cst_25 : f32 to vector<8x1xf32>
      %34 = arith.mulf %32, %33 : vector<8x1xf32>
      %35 = arith.mulf %31, %31 : vector<8x1xf32>
      %36 = arith.subf %34, %35 : vector<8x1xf32>
      %cst_26 = arith.constant 0.000000e+00 : f32
      %37 = vector.broadcast %cst_26 : f32 to vector<8x1xf32>
      %38 = arith.maximumf %36, %37 : vector<8x1xf32>
      %c0_27 = arith.constant 0 : index
      %c0_28 = arith.constant 0 : index
      %39 = vector.load %arg7[%c0_27, %c0_28] : memref<8x1xf32, #tpu.memory_space<vmem>>, vector<8x1xf32>
      %cst_29 = arith.constant 9.99999974E-6 : f32
      %40 = vector.broadcast %cst_29 : f32 to vector<8x1xf32>
      %41 = arith.addf %38, %40 : vector<8x1xf32>
      %42 = math.rsqrt %41 : vector<8x1xf32>
      %43 = arith.mulf %39, %42 : vector<8x1xf32>
      %c0_30 = arith.constant 0 : index
      %c0_31 = arith.constant 0 : index
      %44 = vector.load %arg8[%c0_30, %c0_31] : memref<8x1xf32, #tpu.memory_space<vmem>>, vector<8x1xf32>
      %45 = arith.mulf %31, %43 : vector<8x1xf32>
      %46 = arith.subf %44, %45 : vector<8x1xf32>
      %47 = vector.broadcast %43 : vector<8x1xf32> to vector<8x144xf32>
      %48 = arith.mulf %15, %47 : vector<8x144xf32>
      %49 = vector.broadcast %46 : vector<8x1xf32> to vector<8x144xf32>
      %50 = arith.addf %48, %49 : vector<8x144xf32>
      %cst_32 = arith.constant 0.000000e+00 : f32
      %51 = vector.broadcast %cst_32 : f32 to vector<8x144xf32>
      %52 = arith.maximumf %50, %51 : vector<8x144xf32>
      %c0_33 = arith.constant 0 : index
      %c0_34 = arith.constant 0 : index
      %53 = vector.load %arg9[%c0_33, %c0_34] : memref<8x8xf32, #tpu.memory_space<vmem>>, vector<8x8xf32>
      %cst_35 = arith.constant dense<0.000000e+00> : vector<8x144xf32>
      %54 = tpu.matmul %53, %52, %cst_35 {dimension_numbers = #tpu.dot_dimension_numbers<[1], [0], [0], [1], [0, 0, 1, 1], [], []>} : vector<8x8xf32>, vector<8x144xf32>, vector<8x144xf32> -> vector<8x144xf32>
      %c0_36 = arith.constant 0 : index
      %c0_37 = arith.constant 0 : index
      %55 = vector.load %arg18[%c0_36, %c0_37] : memref<8x1xf32, #tpu.memory_space<vmem>>, vector<8x1xf32>
      %cst_38 = arith.constant dense<0.000000e+00> : vector<8xf32>
      %56 = vector.multi_reduction <add>, %54, %cst_38 [1] : vector<8x144xf32> to vector<8xf32>
      %57 = vector.shape_cast %56 : vector<8xf32> to vector<8x1xf32>
      %58 = arith.addf %55, %57 : vector<8x1xf32>
      %c0_39 = arith.constant 0 : index
      %c0_40 = arith.constant 0 : index
      %59 = vector.load %arg18[%c0_39, %c0_40] : memref<8x1xf32, #tpu.memory_space<vmem>>, vector<8x1xf32>
      tpu.vector_store %arg18[%c0_39, %c0_40], %58 {strides = array<i32>} : memref<8x1xf32, #tpu.memory_space<vmem>>, vector<8x1xf32>,
      %c0_41 = arith.constant 0 : index
      %c0_42 = arith.constant 0 : index
      %60 = vector.load %arg19[%c0_41, %c0_42] : memref<8x1xf32, #tpu.memory_space<vmem>>, vector<8x1xf32>
      %61 = arith.mulf %54, %54 : vector<8x144xf32>
      %cst_43 = arith.constant dense<0.000000e+00> : vector<8xf32>
      %62 = vector.multi_reduction <add>, %61, %cst_43 [1] : vector<8x144xf32> to vector<8xf32>
      %63 = vector.shape_cast %62 : vector<8xf32> to vector<8x1xf32>
      %64 = arith.addf %60, %63 : vector<8x1xf32>
      %c0_44 = arith.constant 0 : index
      %c0_45 = arith.constant 0 : index
      %65 = vector.load %arg19[%c0_44, %c0_45] : memref<8x1xf32, #tpu.memory_space<vmem>>, vector<8x1xf32>
      tpu.vector_store %arg19[%c0_44, %c0_45], %64 {strides = array<i32>} : memref<8x1xf32, #tpu.memory_space<vmem>>, vector<8x1xf32>,
    } else {
    }
    %c1_i32_16 = arith.constant 1 : i32
    %22 = arith.cmpi eq, %arg0, %c1_i32_16 : i32
    %c1_i32_17 = arith.constant 1 : i32
    %23 = arith.cmpi eq, %arg1, %c1_i32_17 : i32
    %24 = arith.andi %22, %23 : i1
    %c0_i32_18 = arith.constant 0 : i32
    %25 = arith.cmpi eq, %arg2, %c0_i32_18 : i32
    %26 = arith.andi %24, %25 : i1
    %27 = arith.extui %26 : i1 to i32
    %c0_i32_19 = arith.constant 0 : i32
    %28 = arith.cmpi ne, %27, %c0_i32_19 : i32
    scf.if %28 {
      %c0_20 = arith.constant 0 : index
      %c0_21 = arith.constant 0 : index
      %29 = vector.load %arg16[%c0_20, %c0_21] : memref<8x1xf32, #tpu.memory_space<vmem>>, vector<8x1xf32>
      %cst_22 = arith.constant 0.00347222225 : f32
      %30 = vector.broadcast %cst_22 : f32 to vector<8x1xf32>
      %31 = arith.mulf %29, %30 : vector<8x1xf32>
      %c0_23 = arith.constant 0 : index
      %c0_24 = arith.constant 0 : index
      %32 = vector.load %arg17[%c0_23, %c0_24] : memref<8x1xf32, #tpu.memory_space<vmem>>, vector<8x1xf32>
      %cst_25 = arith.constant 0.00347222225 : f32
      %33 = vector.broadcast %cst_25 : f32 to vector<8x1xf32>
      %34 = arith.mulf %32, %33 : vector<8x1xf32>
      %35 = arith.mulf %31, %31 : vector<8x1xf32>
      %36 = arith.subf %34, %35 : vector<8x1xf32>
      %cst_26 = arith.constant 0.000000e+00 : f32
      %37 = vector.broadcast %cst_26 : f32 to vector<8x1xf32>
      %38 = arith.maximumf %36, %37 : vector<8x1xf32>
      %c0_27 = arith.constant 0 : index
      %c0_28 = arith.constant 0 : index
      %39 = vector.load %arg7[%c0_27, %c0_28] : memref<8x1xf32, #tpu.memory_space<vmem>>, vector<8x1xf32>
      %cst_29 = arith.constant 9.99999974E-6 : f32
      %40 = vector.broadcast %cst_29 : f32 to vector<8x1xf32>
      %41 = arith.addf %38, %40 : vector<8x1xf32>
      %42 = math.rsqrt %41 : vector<8x1xf32>
      %43 = arith.mulf %39, %42 : vector<8x1xf32>
      %c0_30 = arith.constant 0 : index
      %c0_31 = arith.constant 0 : index
      %44 = vector.load %arg12[%c0_30, %c0_31] : memref<8x1xf32, #tpu.memory_space<vmem>>, vector<8x1xf32>
      tpu.vector_store %arg12[%c0_30, %c0_31], %43 {strides = array<i32>} : memref<8x1xf32, #tpu.memory_space<vmem>>, vector<8x1xf32>,
      %c0_32 = arith.constant 0 : index
      %c0_33 = arith.constant 0 : index
      %45 = vector.load %arg8[%c0_32, %c0_33] : memref<8x1xf32, #tpu.memory_space<vmem>>, vector<8x1xf32>
      %46 = arith.mulf %31, %43 : vector<8x1xf32>
      %47 = arith.subf %45, %46 : vector<8x1xf32>
      %c0_34 = arith.constant 0 : index
      %c0_35 = arith.constant 0 : index
      %48 = vector.load %arg13[%c0_34, %c0_35] : memref<8x1xf32, #tpu.memory_space<vmem>>, vector<8x1xf32>
      tpu.vector_store %arg13[%c0_34, %c0_35], %47 {strides = array<i32>} : memref<8x1xf32, #tpu.memory_space<vmem>>, vector<8x1xf32>,
      %c0_36 = arith.constant 0 : index
      %c0_37 = arith.constant 0 : index
      %49 = vector.load %arg18[%c0_36, %c0_37] : memref<8x1xf32, #tpu.memory_space<vmem>>, vector<8x1xf32>
      %cst_38 = arith.constant 0.00347222225 : f32
      %50 = vector.broadcast %cst_38 : f32 to vector<8x1xf32>
      %51 = arith.mulf %49, %50 : vector<8x1xf32>
      %c0_39 = arith.constant 0 : index
      %c0_40 = arith.constant 0 : index
      %52 = vector.load %arg19[%c0_39, %c0_40] : memref<8x1xf32, #tpu.memory_space<vmem>>, vector<8x1xf32>
      %cst_41 = arith.constant 0.00347222225 : f32
      %53 = vector.broadcast %cst_41 : f32 to vector<8x1xf32>
      %54 = arith.mulf %52, %53 : vector<8x1xf32>
      %55 = arith.mulf %51, %51 : vector<8x1xf32>
      %56 = arith.subf %54, %55 : vector<8x1xf32>
      %cst_42 = arith.constant 0.000000e+00 : f32
      %57 = vector.broadcast %cst_42 : f32 to vector<8x1xf32>
      %58 = arith.maximumf %56, %57 : vector<8x1xf32>
      %c0_43 = arith.constant 0 : index
      %c0_44 = arith.constant 0 : index
      %59 = vector.load %arg10[%c0_43, %c0_44] : memref<8x1xf32, #tpu.memory_space<vmem>>, vector<8x1xf32>
      %cst_45 = arith.constant 9.99999974E-6 : f32
      %60 = vector.broadcast %cst_45 : f32 to vector<8x1xf32>
      %61 = arith.addf %58, %60 : vector<8x1xf32>
      %62 = math.rsqrt %61 : vector<8x1xf32>
      %63 = arith.mulf %59, %62 : vector<8x1xf32>
      %c0_46 = arith.constant 0 : index
      %c0_47 = arith.constant 0 : index
      %64 = vector.load %arg14[%c0_46, %c0_47] : memref<8x1xf32, #tpu.memory_space<vmem>>, vector<8x1xf32>
      tpu.vector_store %arg14[%c0_46, %c0_47], %63 {strides = array<i32>} : memref<8x1xf32, #tpu.memory_space<vmem>>, vector<8x1xf32>,
      %c0_48 = arith.constant 0 : index
      %c0_49 = arith.constant 0 : index
      %65 = vector.load %arg11[%c0_48, %c0_49] : memref<8x1xf32, #tpu.memory_space<vmem>>, vector<8x1xf32>
      %66 = arith.mulf %51, %63 : vector<8x1xf32>
      %67 = arith.subf %65, %66 : vector<8x1xf32>
      %c0_50 = arith.constant 0 : index
      %c0_51 = arith.constant 0 : index
      %68 = vector.load %arg15[%c0_50, %c0_51] : memref<8x1xf32, #tpu.memory_space<vmem>>, vector<8x1xf32>
      tpu.vector_store %arg15[%c0_50, %c0_51], %67 {strides = array<i32>} : memref<8x1xf32, #tpu.memory_space<vmem>>, vector<8x1xf32>,
    } else {
    }
    return
  }
  func.func @transform_0(%arg0: i32, %arg1: i32, %arg2: i32) -> (i32, i32, i32) {
    %c0_i32 = arith.constant 0 : i32
    %c0_i32_0 = arith.constant 0 : i32
    return %arg1, %c0_i32, %arg2 : i32, i32, i32
  }
  func.func @transform_1(%arg0: i32, %arg1: i32, %arg2: i32) -> (i32, i32, i32) {
    %c0_i32 = arith.constant 0 : i32
    %c0_i32_0 = arith.constant 0 : i32
    return %arg1, %c0_i32, %arg2 : i32, i32, i32
  }
  func.func @transform_2(%arg0: i32, %arg1: i32, %arg2: i32) -> (i32, i32) {
    %c0_i32 = arith.constant 0 : i32
    %c0_i32_0 = arith.constant 0 : i32
    %c0_i32_1 = arith.constant 0 : i32
    return %c0_i32, %c0_i32_0 : i32, i32
  }
  func.func @transform_3(%arg0: i32, %arg1: i32, %arg2: i32) -> (i32, i32) {
    %c0_i32 = arith.constant 0 : i32
    %c0_i32_0 = arith.constant 0 : i32
    %c0_i32_1 = arith.constant 0 : i32
    return %c0_i32, %c0_i32_0 : i32, i32
  }
  func.func @transform_4(%arg0: i32, %arg1: i32, %arg2: i32) -> (i32, i32) {
    %c0_i32 = arith.constant 0 : i32
    %c0_i32_0 = arith.constant 0 : i32
    %c0_i32_1 = arith.constant 0 : i32
    return %c0_i32, %c0_i32_0 : i32, i32
  }
  func.func @transform_5(%arg0: i32, %arg1: i32, %arg2: i32) -> (i32, i32) {
    %c0_i32 = arith.constant 0 : i32
    %c0_i32_0 = arith.constant 0 : i32
    %c0_i32_1 = arith.constant 0 : i32
    return %c0_i32, %c0_i32_0 : i32, i32
  }
  func.func @transform_6(%arg0: i32, %arg1: i32, %arg2: i32) -> (i32, i32) {
    %c0_i32 = arith.constant 0 : i32
    %c0_i32_0 = arith.constant 0 : i32
    %c0_i32_1 = arith.constant 0 : i32
    return %c0_i32, %c0_i32_0 : i32, i32
  }
  func.func @transform_7(%arg0: i32, %arg1: i32, %arg2: i32) -> (i32, i32) {
    %c0_i32 = arith.constant 0 : i32
    %c0_i32_0 = arith.constant 0 : i32
    %c0_i32_1 = arith.constant 0 : i32
    return %c0_i32, %c0_i32_0 : i32, i32
  }
  func.func @transform_8(%arg0: i32, %arg1: i32, %arg2: i32) -> (i32, i32) {
    %c0_i32 = arith.constant 0 : i32
    %c0_i32_0 = arith.constant 0 : i32
    %c0_i32_1 = arith.constant 0 : i32
    return %c0_i32, %c0_i32_0 : i32, i32
  }
  func.func @transform_9(%arg0: i32, %arg1: i32, %arg2: i32) -> (i32, i32) {
    %c0_i32 = arith.constant 0 : i32
    %c0_i32_0 = arith.constant 0 : i32
    %c0_i32_1 = arith.constant 0 : i32
    return %c0_i32, %c0_i32_0 : i32, i32
  }
  func.func @transform_10(%arg0: i32, %arg1: i32, %arg2: i32) -> (i32, i32) {
    %c0_i32 = arith.constant 0 : i32
    %c0_i32_0 = arith.constant 0 : i32
    %c0_i32_1 = arith.constant 0 : i32
    return %c0_i32, %c0_i32_0 : i32, i32
  }
  func.func @transform_11(%arg0: i32, %arg1: i32, %arg2: i32) -> (i32, i32) {
    %c0_i32 = arith.constant 0 : i32
    %c0_i32_0 = arith.constant 0 : i32
    %c0_i32_1 = arith.constant 0 : i32
    return %c0_i32, %c0_i32_0 : i32, i32
  }
  func.func @transform_12(%arg0: i32, %arg1: i32, %arg2: i32) -> (i32, i32) {
    %c0_i32 = arith.constant 0 : i32
    %c0_i32_0 = arith.constant 0 : i32
    %c0_i32_1 = arith.constant 0 : i32
    return %c0_i32, %c0_i32_0 : i32, i32
  }
}

</mosaic_0001>

<bundles_post_ra>
// kernel: tpu_custom_call.1
= control target key start
LH: loop header
LB: loop body
LE: loop exit
PB: predicated region body
PF: predicated region fallthrough
CT: control target
= control target key end

     0   :  { %s1100_s21 = smov 0   ;;  %s1102_s22 = smov 0   ;;  %s1204_s0 = inlined_call_operand.vmem [shape: f32[2,4,144], index: 0, kind: input, shape index: {}]   ;;  %s1205_s1 = inlined_call_operand.vmem [shape: f32[2,4,144], index: 1, kind: input, shape index: {}]   ;;  %s1206_s2 = inlined_call_operand.vmem [shape: f32[8,4], index: 2, kind: input, shape index: {}]   ;;  %s1207_s3 = inlined_call_operand.vmem [shape: f32[8,4], index: 3, kind: input, shape index: {}]   ;;  %s1208_s4 = inlined_call_operand.vmem [shape: f32[8,1], index: 4, kind: input, shape index: {}]   ;;  %s1209_s5 = inlined_call_operand.vmem [shape: f32[8,1], index: 5, kind: input, shape index: {}]   ;;  %s1210_s6 = inlined_call_operand.vmem [shape: f32[8,8], index: 6, kind: input, shape index: {}]   ;;  %s1211_s7 = inlined_call_operand.vmem [shape: f32[8,1], index: 7, kind: input, shape index: {}]   ;;  %s1212_s8 = inlined_call_operand.vmem [shape: f32[8,1], index: 8, kind: input, shape index: {}]   ;;  %s1213_s9 = inlined_call_operand.vmem [shape: f32[8,1], index: 9, kind: output, shape index: {0}]   ;;  %s1214_s10 = inlined_call_operand.vmem [shape: f32[8,1], index: 10, kind: output, shape index: {1}]   ;;  %s1215_s11 = inlined_call_operand.vmem [shape: f32[8,1], index: 11, kind: output, shape index: {2}]   ;;  %s1216_s12 = inlined_call_operand.vmem [shape: f32[8,1], index: 12, kind: output, shape index: {3}]  }
   0x1   :  { %s1104_s23 = smov 0   ;;  %s1106_s24 = smov 0  }
   0x2   :  { %s1108_s25 = smov 0  }
   0x3 LB: > { %s38_s26 = sadd.s32 1, %s1021_s23  ;;  %s42_s27 = sadd.s32 1, %s1025_s24  ;;  %s1029_s25 = sphi %s1108_s25, %s23_s25   ;;  %s1025_s24 = sphi %s1106_s24, %s1220_s24   ;;  %s1021_s23 = sphi %s1104_s23, %s1219_s23   ;;  %s1017_s22 = sphi %s1102_s22, %s1218_s22   ;;  %s1013_s21 = sphi %s1100_s21, %s1217_s21  }
   0x4   : > { %p40_p0 = scmp.ge.s32.totalorder %s38_s26, 2  ;;  %p918_p1 = scmp.ge.s32.totalorder %s1029_s25, 1 }
   0x5   : > { %p392_p2 = scmp.lt.s32.totalorder %s1029_s25, 5 }
   0x6   : > { %s1222_s26 = smov (%p40_p0, %s38_s26), 0  ;;  %s1224_s27 = smov (!%p40_p0, %s42_s27), %s1025_s24 }
   0x7   : > { %p393_p3 = pnand %p918_p1, %p392_p2  ;;  %p44_p4 = scmp.ge.s32.totalorder %s1224_s27, 2 }
   0x8   : > { %p443_p5 = scmp.lt.s32.totalorder (!%p393_p3), %s1013_s21, 1  ;;  %p462_p6 = scmp.eq.s32.totalorder (!%p393_p3), %s1017_s22, 0 }
   0x9   : > { %s1226_s27 = smov (%p44_p4, %s1224_s27), 0  ;;  %396 = sbr.rel (%p393_p3) target bundleno = 927 (0x39f), region = 56 }
   0xa   : > { %p463_p7 = scmp.eq.s32.totalorder (!%p393_p3), %s1013_s21, 0 }
   0xc   : > { %p464_p8 = pnand (!%p393_p3), %p463_p7, %p462_p6 }
   0xe   : > { %s444_s28 = scalar_select %p443_p5, %s1013_s21, 1 }
   0xf   : > { %470 = sbr.rel (%p464_p8) target bundleno = 23 (0x17), region = 60 }
  0x10   : > { %s936_s29 = sshll.u32 %s444_s28, 3 }
  0x11   : > { %s450_s14 = scalar_lea.vmem %s1204_s0, %s936_s29  ;;  %s460_s17 = scalar_lea.vmem %s1205_s1, %s936_s29 }
  0x14   : > { %vm471_vm0 = vcmask 7168   ;;  %v1031_v0 = vmov 0.0  }
  0x15   : > { %472 = vst.msk [vmem:[#allocation2] sm:$0xff] %vm471_vm0, %v1031_v0  ;;  %473 = vst.msk [vmem:[#allocation3] sm:$0xff] %vm471_vm0, %v1031_v0 }
  0x16   : > { %474 = vst.msk [vmem:[#allocation4] sm:$0xff] %vm471_vm0, %v1031_v0  ;;  %475 = vst.msk [vmem:[#allocation5] sm:$0xff] %vm471_vm0, %v1031_v0 }
  0x17 PF: > { %v479_v1 = vld [vmem:[%s460_s17] sm:$0xff]  ;;  %vm486_vm1 = vcmask 1043456   ;;  %v1032_v5 = vmov 0.0   ;;  %vm482_vm2 = vcmask 31744   ;;  %p930_p9 = scmp.ne.s32.totalorder %s1017_s22, 0 }
  0x18   : > { %v477_v2 = vld [vmem:[%s450_s14] sm:$0xff]  ;;  %v481_v3 = vcombine.high %v479_v1, %v479_v1  ;;  %555 = vmatprep.mubr.f32.mxu0 %v1032_v5  ;;  %635 = vmatprep.mubr.f32.mxu1 %v1032_v5 }
  0x19   : > { %v563_v4 = vcombine.high %v477_v2, %v477_v2  ;;  %v478_v6 = vld [vmem:[%s1207_s3] sm:$0xff] }
  0x1a   : > { %v476_v7 = vld [vmem:[%s1206_s2] sm:$0xff]  ;;  %924 = vmatprep.subr.msk.mxu0 %vm486_vm1, %v481_v3 }
  0x1b   : > { %927 = vmatprep.subr.msk.mxu1 %vm486_vm1, %v563_v4  ;;  %925 = vmatpush1.msk.msra.mxu0 %vm486_vm1, %v479_v1 }
  0x1c   : > { %928 = vmatpush1.msk.msra.mxu1 %vm486_vm1, %v477_v2  ;;  %926 = vmatmul.mubr.msk.f32.vlgmr.msra.gmra.mxu0 %vm482_vm2, %v478_v6 }
  0x1d   : > { %929 = vmatmul.mubr.msk.f32.vlgmr.msra.gmra.mxu1 %vm482_vm2, %v476_v7 }
  0xdc   : > { %v557_v8 = vpop.f32.mrf.mxu0  ;;  %644 = sbr.rel (%p930_p9) target bundleno = 374 (0x176), region = 64 }
  0xdd   : > { %v637_v9 = vpop.f32.mrf.mxu1 }
  0xde   : > { %v638_v10 = vadd.f32 %v637_v9, %v557_v8  ;;  %v559_v11 = vpop.f32.mrf.mxu0 }
  0xdf   : > { %v639_v12 = vpop.f32.mrf.mxu1 }
  0xe0   : > { %v640_v13 = vadd.f32 %v639_v12, %v559_v11 }
  0xe1   : > { %vm646_vm3 = vcmask 130048   ;;  %v655_v15 = vmul.f32 %v638_v10, %v638_v10  ;;  %v645_v20 = vld [vmem:[#allocation2] sm:$0xff]  ;;  %vm652_vm4 = vcmask 7168   ;;  %v654_v23 = vld [vmem:[#allocation3] sm:$0xff] }
  0xe2   : > { %v656_v14 = vmul.f32 %v640_v13, %v640_v13  ;;  %v647_v16 = vsel %vm646_vm3, %v640_v13, 0.0 }
  0xe3   : > { %v648_v17 = vadd.f32 %v647_v16, %v638_v10 }
  0xe4   : > { %v657_v18 = vsel %vm646_vm3, %v656_v14, 0.0 }
  0xe5   : > { %649 = vadd.xlane.f32.xlu0 %v648_v17  ;;  %v658_v19 = vadd.f32 %v657_v18, %v655_v15 }
  0xe9   : > { %659 = vadd.xlane.f32.xlu0 %v658_v19 }
 0x16e   : > { %v650_v21 = vpop.xlane.xlu0 %649 }
 0x16f   : > { %v651_v22 = vadd.f32 %v650_v21, %v645_v20 }
 0x171   : > { %653 = vst.msk [vmem:[#allocation2] sm:$0xff] %vm652_vm4, %v651_v22 }
 0x172   : > { %v660_v24 = vpop.xlane.xlu0 %659 }
 0x173   : > { %v661_v25 = vadd.f32 %v660_v24, %v654_v23 }
 0x175   : > { %662 = vst.msk [vmem:[#allocation3] sm:$0xff] %vm652_vm4, %v661_v25 }
 0x176 PF: > { %p663_p10 = scmp.eq.s32.totalorder %s1017_s22, 1  ;;  %p931_p11 = scmp.ne.s32.totalorder %s1017_s22, 1 }
 0x178   : > { %666 = sbr.rel (%p931_p11) target bundleno = 885 (0x375), region = 68 }
 0x17d   : > { %v667_v26 = vld [vmem:[#allocation2] sm:$0xff]  ;;  %v669_v27 = vld [vmem:[#allocation3] sm:$0xff]  ;;  %v1033_v28 = vmov 0   ;;  %v1034_v41 = vmov 0.0   ;;  %vm698_vm5 = vcmask 64512   ;;  %vm774_vm6 = vcmask 130048  }
 0x17e   : > { %984 = vset.pattern.permute.xlu0 %v1033_v28  ;;  %v668_v29 = vmul.f32 0.0034722222, %v667_v26  ;;  %v670_v30 = vmul.f32 0.0034722222, %v669_v27  ;;  %v674_v35 = vld [vmem:[%s1208_s4] sm:$0xff]  ;;  %766 = vmatprep.mubr.f32.mxu0 %v1034_v41  ;;  %v773_v59 = vld [vmem:[#allocation4] sm:$0xff] }
 0x17f   : > { %v678_v38 = vld [vmem:[%s1209_s5] sm:$0xff]  ;;  %vm780_vm7 = vcmask 7168   ;;  %v782_v62 = vld [vmem:[#allocation5] sm:$0xff] }
 0x180   : > { %v671_v31 = vmul.f32 %v668_v29, %v668_v29  ;;  %v697_v50 = vld [vmem:[%s1210_s6] sm:$0xff] }
 0x182   : > { %v672_v32 = vsub.f32 %v670_v30, %v671_v31 }
 0x184   : > { %v673_v33 = vmax.f32 %v672_v32, 0.0 }
 0x186   : > { %v675_v34 = vadd.f32 1e-05, %v673_v33 }
 0x188   : > { %985 = vrsqrt.f32 %v675_v34 }
 0x195   : > { %v986_v36 = vpop.eup %985 }
 0x196   : > { %v677_v37 = vmul.f32 %v986_v36, %v674_v35 }
 0x198   : > { %683 = vperm.xlu0 %984, %v677_v37   ;;  %v679_v39 = vmul.f32 %v677_v37, %v668_v29 }
 0x19a   : > { %v680_v40 = vsub.f32 %v678_v38, %v679_v39 }
 0x19c   : > { %690 = vperm.xlu0 %984, %v680_v40  }
 0x213   : > { %v684_v42 = vpop.permute.xlu0 %683 }
 0x214   : > { %v686_v43 = vmul.f32 %v684_v42, %v638_v10  ;;  %v687_v44 = vmul.f32 %v684_v42, %v640_v13 }
 0x217   : > { %v691_v45 = vpop.permute.xlu0 %690 }
 0x218   : > { %v693_v46 = vadd.f32 %v691_v45, %v686_v43  ;;  %v694_v47 = vadd.f32 %v691_v45, %v687_v44 }
 0x21a   : > { %v695_v48 = vmax.f32 %v693_v46, 0.0  ;;  %v696_v49 = vmax.f32 %v694_v47, 0.0 }
 0x21c   : > { %732 = vmatprep.subr.mxu0 %v696_v49 }
 0x21d   : > { %733 = vmatpush1.msra.mxu0 %v695_v48 }
 0x21e   : > { %932 = vmatmul.mubr.msk.f32.vlgmr.msra.gmra.mxu0 %vm698_vm5, %v697_v50 }
 0x2de   : > { %v768_v51 = vpop.f32.mrf.mxu0 }
 0x2df   : > { %v783_v57 = vmul.f32 %v768_v51, %v768_v51 }
 0x2e0   : > { %v770_v52 = vpop.f32.mrf.mxu0 }
 0x2e1   : > { %v775_v53 = vsel %vm774_vm6, %v770_v52, 0.0  ;;  %v784_v54 = vmul.f32 %v770_v52, %v770_v52 }
 0x2e2   : > { %v776_v55 = vadd.f32 %v775_v53, %v768_v51 }
 0x2e3   : > { %v785_v56 = vsel %vm774_vm6, %v784_v54, 0.0 }
 0x2e4   : > { %777 = vadd.xlane.f32.xlu1 %v776_v55  ;;  %v786_v58 = vadd.f32 %v785_v56, %v783_v57 }
 0x2e8   : > { %787 = vadd.xlane.f32.xlu1 %v786_v58 }
 0x36d   : > { %v778_v60 = vpop.xlane.xlu1 %777 }
 0x36e   : > { %v779_v61 = vadd.f32 %v778_v60, %v773_v59 }
 0x370   : > { %781 = vst.msk [vmem:[#allocation4] sm:$0xff] %vm780_vm7, %v779_v61 }
 0x371   : > { %v788_v63 = vpop.xlane.xlu1 %787 }
 0x372   : > { %v789_v0 = vadd.f32 %v788_v63, %v782_v62 }
 0x374   : > { %790 = vst.msk [vmem:[#allocation5] sm:$0xff] %vm780_vm7, %v789_v0 }
 0x375 PF: > { %p791_p12 = scmp.eq.s32.totalorder %s1013_s21, 1 }
 0x377   : > { %p792_p13 = pnand %p791_p12, %p663_p10 }
 0x379   : > { %797 = sbr.rel (%p792_p13) target bundleno = 927 (0x39f), region = 72 }
 0x37e   : > { %v798_v1 = vld [vmem:[#allocation2] sm:$0xff]  ;;  %v800_v2 = vld [vmem:[#allocation3] sm:$0xff]  ;;  %v815_v5 = vld [vmem:[#allocation4] sm:$0xff]  ;;  %vm809_vm8 = vcmask 7168  }
 0x37f   : > { %v799_v3 = vmul.f32 0.0034722222, %v798_v1  ;;  %v801_v4 = vmul.f32 0.0034722222, %v800_v2  ;;  %v816_v6 = vmul.f32 0.0034722222, %v815_v5 }
 0x380   : > { %v817_v7 = vld [vmem:[#allocation5] sm:$0xff]  ;;  %v805_v17 = vld [vmem:[%s1208_s4] sm:$0xff] }
 0x381   : > { %v802_v8 = vmul.f32 %v799_v3, %v799_v3  ;;  %v818_v9 = vmul.f32 0.0034722222, %v817_v7  ;;  %v819_v10 = vmul.f32 %v816_v6, %v816_v6  ;;  %v822_v18 = vld [vmem:[%s1211_s7] sm:$0xff] }
 0x382   : > { %v811_v22 = vld [vmem:[%s1209_s5] sm:$0xff] }
 0x383   : > { %v803_v11 = vsub.f32 %v801_v4, %v802_v8  ;;  %v820_v12 = vsub.f32 %v818_v9, %v819_v10  ;;  %v827_v25 = vld [vmem:[%s1212_s8] sm:$0xff] }
 0x385   : > { %v804_v13 = vmax.f32 %v803_v11, 0.0  ;;  %v821_v14 = vmax.f32 %v820_v12, 0.0 }
 0x387   : > { %v806_v15 = vadd.f32 1e-05, %v804_v13  ;;  %v823_v16 = vadd.f32 1e-05, %v821_v14 }
 0x389   : > { %987 = vrsqrt.f32 %v806_v15 }
 0x38a   : > { %989 = vrsqrt.f32 %v823_v16 }
 0x396   : > { %v988_v19 = vpop.eup %987 }
 0x397   : > { %v990_v20 = vpop.eup %989  ;;  %v808_v21 = vmul.f32 %v988_v19, %v805_v17 }
 0x398   : > { %v825_v23 = vmul.f32 %v990_v20, %v822_v18 }
 0x399   : > { %810 = vst.msk [vmem:[%s1213_s9] sm:$0xff] %vm809_vm8, %v808_v21  ;;  %v812_v24 = vmul.f32 %v808_v21, %v799_v3 }
 0x39a   : > { %826 = vst.msk [vmem:[%s1215_s11] sm:$0xff] %vm809_vm8, %v825_v23  ;;  %v828_v26 = vmul.f32 %v825_v23, %v816_v6 }
 0x39b   : > { %v813_v27 = vsub.f32 %v811_v22, %v812_v24 }
 0x39c   : > { %v829_v28 = vsub.f32 %v827_v25, %v828_v26 }
 0x39d   : > { %814 = vst.msk [vmem:[%s1214_s10] sm:$0xff] %vm809_vm8, %v813_v27 }
 0x39e   : > { %830 = vst.msk [vmem:[%s1216_s12] sm:$0xff] %vm809_vm8, %v829_v28 }
 0x39f PF: > { %s23_s25 = sadd.s32 1, %s1029_s25   ;;  %s1217_s21 = smov %s1021_s23 }
 0x3a0   : > { %p20_p0 = scmp.ge.s32.totalorder %s23_s25, 6   ;;  %s1218_s22 = smov %s1025_s24 }
 0x3a1   : > { %s1219_s23 = smov %s1222_s26  ;;  %s1220_s24 = smov %s1226_s27 }
 0x3a2   :  { %22 = sbr.rel (!%p20_p0) target bundleno = 3 (0x3), region = 125 }

</bundles_post_ra>
